<compile_context>
chip_gen: v7x
topology: tpu7x:2x2x1
jax: 0.10.0
libtpu: 0.0.40
codegen_flags: <defaults>
</compile_context>

<pallas_src>
import functools

import jax
import jax.numpy as jnp
from jax.experimental import pallas as pl
from jax.experimental.pallas import tpu as pltpu

EPS = 1e-5


def _fasternet_kernel(x_ref, wc_ref, w1_ref, w2_ref, s_ref, b_ref, ml_ref, mr_ref,
                      o_ref, xfp_ref, *, H, W, Cp, compute_dtype):
    """One batch sample per grid step; everything stays resident in VMEM.

    x_ref  : (1, C, H*W)   input, channels on sublanes, pixels on lanes
    wc_ref : (Cp, 9*Cp)    3x3 partial-conv weight, tap-major im2col layout
    w1_ref : (Ch, C)       first 1x1 conv weight (bias-free)
    w2_ref : (C, Ch)       second 1x1 conv weight (bias-free)
    s_ref  : (Ch, 1)       folded BatchNorm scale  (gamma / sqrt(var + eps))
    b_ref  : (Ch, 1)       folded BatchNorm shift  (beta - mean * scale)
    ml_ref : (1, H*W)      column mask for dx==0 taps (zero where x == 0)
    mr_ref : (1, H*W)      column mask for dx==2 taps (zero where x == W-1)
    o_ref  : (1, C, H*W)   output
    xfp_ref: (Cp, H*W + 2*(W+1)) VMEM scratch: zero-padded flattened conv input
    """
    HW = H * W
    cdt = compute_dtype

    x = x_ref[0]                               # (C, HW) f32
    x1 = x[:Cp, :]                             # channels touched by the partial conv

    # In-kernel zero padding of the flattened image (halo of W+1 zeros on each side).
    zhalo = jnp.zeros((Cp, W + 1), jnp.float32)
    xfp_ref[:, :W + 1] = zhalo
    xfp_ref[:, W + 1 + HW:] = zhalo
    xfp_ref[:, W + 1:W + 1 + HW] = x1
    xfp = xfp_ref[...]

    mask_l = ml_ref[...]
    mask_r = mr_ref[...]

    # im2col: 9 lane-shifted taps of the padded flat image -> (9*Cp, HW).
    # The flat shift for tap (dy, dx) is (dy-1)*W + (dx-1); the W+1 halo absorbs the row
    # under/overflow and the column masks kill the x==0 / x==W-1 wrap-around.
    taps = []
    for dy in range(3):
        for dx in range(3):
            start = dy * W + dx
            t = xfp[:, start:start + HW]
            if dx == 0:
                t = t * mask_l
            elif dx == 2:
                t = t * mask_r
            taps.append(t)
    cols = jnp.concatenate(taps, axis=0).astype(cdt)                      # (9*Cp, HW)

    # Partial 3x3 conv (bias-free) as ONE fat MXU matmul, f32 accumulation.
    conv = jnp.dot(wc_ref[...], cols, preferred_element_type=jnp.float32)  # (Cp, HW)

    # PConv 'split_cat': untouched channels pass straight through.
    mix = jnp.concatenate([conv, x[Cp:, :]], axis=0)                      # (C, HW)

    # MLP: 1x1 conv -> folded BatchNorm -> ReLU -> 1x1 conv (lane-dense matmuls).
    h = jnp.dot(w1_ref[...], mix.astype(cdt), preferred_element_type=jnp.float32)
    h = jnp.maximum(h * s_ref[...] + b_ref[...], 0.0)                     # (Ch, HW)
    y = jnp.dot(w2_ref[...], h.astype(cdt), preferred_element_type=jnp.float32)

    # Residual from the ORIGINAL input (shortcut is taken before spatial mixing).
    o_ref[0] = (x + y).astype(o_ref.dtype)


@functools.partial(jax.jit, static_argnames=("n_div", "eps", "compute_dtype"))
def fasternet_block(x, w_conv, w1, bn_mean, bn_var, bn_gamma, bn_beta, w2,
                    *, n_div=4, eps=EPS, compute_dtype=jnp.float32):
    """FasterNetBlock forward. x: (N, C, H, W) f32 (NCHW, PyTorch layout).

    w_conv: (Cp, Cp, 3, 3)  PConv partial 3x3 conv weight (Cp = C // n_div, bias-free)
    w1:     (Ch, C)         first 1x1 conv weight  (Ch = mlp hidden ch, bias-free)
    bn_*:   (Ch,)           BatchNorm2d running stats + affine params (inference mode)
    w2:     (C, Ch)         second 1x1 conv weight (bias-free)
    """
    N, C, H, W = x.shape
    Cp = C // n_div
    Ch = w1.shape[0]
    HW = H * W
    assert 0 < Cp < C and w_conv.shape == (Cp, Cp, 3, 3)
    assert w1.shape == (Ch, C) and w2.shape == (C, Ch)

    x3 = x.reshape(N, C, HW)                     # free reshape, stays NCHW / lane-dense

    # Conv weight -> im2col layout: wc[o, (dy*3 + dx)*Cp + i] = w_conv[o, i, dy, dx].
    wc = jnp.transpose(w_conv, (0, 2, 3, 1)).reshape(Cp, 9 * Cp).astype(compute_dtype)
    w1m = w1.astype(compute_dtype)
    w2m = w2.astype(compute_dtype)

    # Fold inference-mode BatchNorm into per-channel scale/shift (kept in f32).
    scale = (bn_gamma * jax.lax.rsqrt(bn_var + eps)).astype(jnp.float32)
    shift = (bn_beta - bn_mean * scale).astype(jnp.float32)
    scale = scale.reshape(Ch, 1)
    shift = shift.reshape(Ch, 1)

    # Column-boundary masks for the left / right conv taps (tiny, computed once).
    col = jnp.arange(HW, dtype=jnp.int32) % W
    mask_l = (col != 0).astype(jnp.float32).reshape(1, HW)
    mask_r = (col != W - 1).astype(jnp.float32).reshape(1, HW)

    kernel = functools.partial(_fasternet_kernel, H=H, W=W, Cp=Cp,
                               compute_dtype=compute_dtype)
    out3 = pl.pallas_call(
        kernel,
        out_shape=jax.ShapeDtypeStruct((N, C, HW), x.dtype),
        grid=(N,),
        in_specs=[
            pl.BlockSpec((1, C, HW), lambda n: (n, 0, 0)),      # x (per-sample block)
            pl.BlockSpec((Cp, 9 * Cp), lambda n: (0, 0)),       # conv weight (im2col)
            pl.BlockSpec((Ch, C), lambda n: (0, 0)),            # 1x1 conv #1
            pl.BlockSpec((C, Ch), lambda n: (0, 0)),            # 1x1 conv #2
            pl.BlockSpec((Ch, 1), lambda n: (0, 0)),            # BN scale
            pl.BlockSpec((Ch, 1), lambda n: (0, 0)),            # BN shift
            pl.BlockSpec((1, HW), lambda n: (0, 0)),            # left-column mask
            pl.BlockSpec((1, HW), lambda n: (0, 0)),            # right-column mask
        ],
        out_specs=pl.BlockSpec((1, C, HW), lambda n: (n, 0, 0)),
        scratch_shapes=[pltpu.VMEM((Cp, HW + 2 * (W + 1)), jnp.float32)],
        compiler_params=pltpu.CompilerParams(dimension_semantics=("parallel",)),
    )(x3, wc, w1m, w2m, scale, shift, mask_l, mask_r)
    return out3.reshape(N, C, H, W)


# ----------------------------- pure-JAX reference -----------------------------
def _ref_forward(x, w_conv, w1, bn_mean, bn_var, bn_gamma, bn_beta, w2, n_div,
                 eps=EPS):
    C = x.shape[1]
    Cp = C // n_div
    hp = jax.lax.Precision.HIGHEST
    x1 = jax.lax.conv_general_dilated(
        x[:, :Cp], w_conv, window_strides=(1, 1), padding=((1, 1), (1, 1)),
        dimension_numbers=("NCHW", "OIHW", "NCHW"), precision=hp)
    mix = jnp.concatenate([x1, x[:, Cp:]], axis=1)                 # PConv split_cat
    h = jnp.einsum("oc,nchw->nohw", w1, mix, precision=hp)         # 1x1 conv, no bias
    h = (h - bn_mean[None, :, None, None]) * jax.lax.rsqrt(
        bn_var[None, :, None, None] + eps)
    h = h * bn_gamma[None, :, None, None] + bn_beta[None, :, None, None]
    h = jnp.maximum(h, 0.0)                                        # ReLU
    y = jnp.einsum("oc,nchw->nohw", w2, h, precision=hp)           # 1x1 conv, no bias
    return x + y                                                   # DropPath == Identity


if __name__ == "__main__":
    N, C, H, W = 2, 4, 16, 16
    n_div, mlp_ratio = 4, 2
    Cp, Ch = C // n_div, C * mlp_ratio

    key = jax.random.PRNGKey(0)
    ks = jax.random.split(key, 8)
    x = jax.random.normal(ks[0], (N, C, H, W), jnp.float32)
    w_conv = 0.3 * jax.random.normal(ks[1], (Cp, Cp, 3, 3), jnp.float32)
    w1 = 0.3 * jax.random.normal(ks[2], (Ch, C), jnp.float32)
    w2 = 0.3 * jax.random.normal(ks[3], (C, Ch), jnp.float32)
    bn_mean = 0.1 * jax.random.normal(ks[4], (Ch,), jnp.float32)
    bn_var = jax.random.uniform(ks[5], (Ch,), jnp.float32, 0.5, 1.5)
    bn_gamma = 1.0 + 0.1 * jax.random.normal(ks[6], (Ch,), jnp.float32)
    bn_beta = 0.1 * jax.random.normal(ks[7], (Ch,), jnp.float32)

    y = fasternet_block(x, w_conv, w1, bn_mean, bn_var, bn_gamma, bn_beta, w2,
                        n_div=n_div)
    y = jax.block_until_ready(y)

    y_ref = _ref_forward(x, w_conv, w1, bn_mean, bn_var, bn_gamma, bn_beta, w2, n_div)
    err = float(jnp.max(jnp.abs(y - y_ref)))
    assert jnp.allclose(y, y_ref, atol=1e-4, rtol=1e-4), err
    print("KERNEL_OK")
</pallas_src>

<mosaic_0001>
module attributes {stable_mosaic.version = 11 : i64} {
  func.func @_fasternet_kernel(%arg0: i32, %arg1: memref<1x4x256xf32, #tpu.memory_space<vmem>>, %arg2: memref<1x9xf32, #tpu.memory_space<vmem>>, %arg3: memref<8x4xf32, #tpu.memory_space<vmem>>, %arg4: memref<4x8xf32, #tpu.memory_space<vmem>>, %arg5: memref<8x1xf32, #tpu.memory_space<vmem>>, %arg6: memref<8x1xf32, #tpu.memory_space<vmem>>, %arg7: memref<1x256xf32, #tpu.memory_space<vmem>>, %arg8: memref<1x256xf32, #tpu.memory_space<vmem>>, %arg9: memref<1x4x256xf32, #tpu.memory_space<vmem>>, %arg10: memref<1x290xf32, #tpu.memory_space<vmem>>) attributes {dimension_semantics = [#tpu.dimension_semantics<parallel>], iteration_bounds = array<i64: 2>, scalar_prefetch = 0 : i64, scratch_operands = 1 : i64, tpu.core_type = #tpu.core_type<tc>, window_params = [{transform_indices = @transform_0, window_bounds = array<i64: 1, 4, 256>}, {pipeline_mode = #tpu.pipeline_mode<synchronous>, transform_indices = @transform_1, window_bounds = array<i64: 1, 9>}, {pipeline_mode = #tpu.pipeline_mode<synchronous>, transform_indices = @transform_2, window_bounds = array<i64: 8, 4>}, {pipeline_mode = #tpu.pipeline_mode<synchronous>, transform_indices = @transform_3, window_bounds = array<i64: 4, 8>}, {pipeline_mode = #tpu.pipeline_mode<synchronous>, transform_indices = @transform_4, window_bounds = array<i64: 8, 1>}, {pipeline_mode = #tpu.pipeline_mode<synchronous>, transform_indices = @transform_5, window_bounds = array<i64: 8, 1>}, {pipeline_mode = #tpu.pipeline_mode<synchronous>, transform_indices = @transform_6, window_bounds = array<i64: 1, 256>}, {pipeline_mode = #tpu.pipeline_mode<synchronous>, transform_indices = @transform_7, window_bounds = array<i64: 1, 256>}, {transform_indices = @transform_8, window_bounds = array<i64: 1, 4, 256>}]} {
    %c0 = arith.constant 0 : index
    %c0_0 = arith.constant 0 : index
    %c0_1 = arith.constant 0 : index
    %0 = vector.load %arg1[%c0, %c0_0, %c0_1] : memref<1x4x256xf32, #tpu.memory_space<vmem>>, vector<1x4x256xf32>
    %1 = vector.shape_cast %0 : vector<1x4x256xf32> to vector<4x256xf32>
    %2 = vector.extract_strided_slice %1 {offsets = [0, 0], sizes = [1, 256], strides = [1, 1]} : vector<4x256xf32> to vector<1x256xf32>
    %cst = arith.constant 0.000000e+00 : f32
    %3 = vector.broadcast %cst : f32 to vector<1x17xf32>
    %c0_2 = arith.constant 0 : index
    %c0_3 = arith.constant 0 : index
    %4 = vector.load %arg10[%c0_2, %c0_3] : memref<1x290xf32, #tpu.memory_space<vmem>>, vector<1x17xf32>
    tpu.vector_store %arg10[%c0_2, %c0_3], %3 {strides = array<i32>} : memref<1x290xf32, #tpu.memory_space<vmem>>, vector<1x17xf32>,
    %c0_4 = arith.constant 0 : index
    %c273 = arith.constant 273 : index
    %5 = vector.load %arg10[%c0_4, %c273] : memref<1x290xf32, #tpu.memory_space<vmem>>, vector<1x17xf32>
    tpu.vector_store %arg10[%c0_4, %c273], %3 {strides = array<i32>} : memref<1x290xf32, #tpu.memory_space<vmem>>, vector<1x17xf32>,
    %c0_5 = arith.constant 0 : index
    %c17 = arith.constant 17 : index
    %6 = vector.load %arg10[%c0_5, %c17] : memref<1x290xf32, #tpu.memory_space<vmem>>, vector<1x256xf32>
    tpu.vector_store %arg10[%c0_5, %c17], %2 {strides = array<i32>} : memref<1x290xf32, #tpu.memory_space<vmem>>, vector<1x256xf32>,
    %c0_6 = arith.constant 0 : index
    %c0_7 = arith.constant 0 : index
    %7 = vector.load %arg10[%c0_6, %c0_7] : memref<1x290xf32, #tpu.memory_space<vmem>>, vector<1x290xf32>
    %c0_8 = arith.constant 0 : index
    %c0_9 = arith.constant 0 : index
    %8 = vector.load %arg7[%c0_8, %c0_9] : memref<1x256xf32, #tpu.memory_space<vmem>>, vector<1x256xf32>
    %c0_10 = arith.constant 0 : index
    %c0_11 = arith.constant 0 : index
    %9 = vector.load %arg8[%c0_10, %c0_11] : memref<1x256xf32, #tpu.memory_space<vmem>>, vector<1x256xf32>
    %10 = vector.extract_strided_slice %7 {offsets = [0, 0], sizes = [1, 256], strides = [1, 1]} : vector<1x290xf32> to vector<1x256xf32>
    %11 = arith.mulf %10, %8 : vector<1x256xf32>
    %12 = vector.extract_strided_slice %7 {offsets = [0, 1], sizes = [1, 256], strides = [1, 1]} : vector<1x290xf32> to vector<1x256xf32>
    %13 = vector.extract_strided_slice %7 {offsets = [0, 2], sizes = [1, 256], strides = [1, 1]} : vector<1x290xf32> to vector<1x256xf32>
    %14 = arith.mulf %13, %9 : vector<1x256xf32>
    %15 = vector.extract_strided_slice %7 {offsets = [0, 16], sizes = [1, 256], strides = [1, 1]} : vector<1x290xf32> to vector<1x256xf32>
    %16 = arith.mulf %15, %8 : vector<1x256xf32>
    %17 = vector.extract_strided_slice %7 {offsets = [0, 17], sizes = [1, 256], strides = [1, 1]} : vector<1x290xf32> to vector<1x256xf32>
    %18 = vector.extract_strided_slice %7 {offsets = [0, 18], sizes = [1, 256], strides = [1, 1]} : vector<1x290xf32> to vector<1x256xf32>
    %19 = arith.mulf %18, %9 : vector<1x256xf32>
    %20 = vector.extract_strided_slice %7 {offsets = [0, 32], sizes = [1, 256], strides = [1, 1]} : vector<1x290xf32> to vector<1x256xf32>
    %21 = arith.mulf %20, %8 : vector<1x256xf32>
    %22 = vector.extract_strided_slice %7 {offsets = [0, 33], sizes = [1, 256], strides = [1, 1]} : vector<1x290xf32> to vector<1x256xf32>
    %23 = vector.extract_strided_slice %7 {offsets = [0, 34], sizes = [1, 256], strides = [1, 1]} : vector<1x290xf32> to vector<1x256xf32>
    %24 = arith.mulf %23, %9 : vector<1x256xf32>
    %25 = tpu.concatenate %11, %12, %14, %16, %17, %19, %21, %22, %24 in 0 : vector<1x256xf32>, vector<1x256xf32>, vector<1x256xf32>, vector<1x256xf32>, vector<1x256xf32>, vector<1x256xf32>, vector<1x256xf32>, vector<1x256xf32>, vector<1x256xf32> -> vector<9x256xf32>
    %c0_12 = arith.constant 0 : index
    %c0_13 = arith.constant 0 : index
    %26 = vector.load %arg2[%c0_12, %c0_13] : memref<1x9xf32, #tpu.memory_space<vmem>>, vector<1x9xf32>
    %cst_14 = arith.constant dense<0.000000e+00> : vector<1x256xf32>
    %27 = tpu.matmul %26, %25, %cst_14 {dimension_numbers = #tpu.dot_dimension_numbers<[1], [0], [0], [1], [0, 0, 1, 1], [], []>} : vector<1x9xf32>, vector<9x256xf32>, vector<1x256xf32> -> vector<1x256xf32>
    %28 = vector.extract_strided_slice %1 {offsets = [1, 0], sizes = [3, 256], strides = [1, 1]} : vector<4x256xf32> to vector<3x256xf32>
    %29 = tpu.concatenate %27, %28 in 0 : vector<1x256xf32>, vector<3x256xf32> -> vector<4x256xf32>
    %c0_15 = arith.constant 0 : index
    %c0_16 = arith.constant 0 : index
    %30 = vector.load %arg3[%c0_15, %c0_16] : memref<8x4xf32, #tpu.memory_space<vmem>>, vector<8x4xf32>
    %cst_17 = arith.constant dense<0.000000e+00> : vector<8x256xf32>
    %31 = tpu.matmul %30, %29, %cst_17 {dimension_numbers = #tpu.dot_dimension_numbers<[1], [0], [0], [1], [0, 0, 1, 1], [], []>} : vector<8x4xf32>, vector<4x256xf32>, vector<8x256xf32> -> vector<8x256xf32>
    %c0_18 = arith.constant 0 : index
    %c0_19 = arith.constant 0 : index
    %32 = vector.load %arg5[%c0_18, %c0_19] : memref<8x1xf32, #tpu.memory_space<vmem>>, vector<8x1xf32>
    %33 = vector.broadcast %32 : vector<8x1xf32> to vector<8x256xf32>
    %34 = arith.mulf %31, %33 : vector<8x256xf32>
    %c0_20 = arith.constant 0 : index
    %c0_21 = arith.constant 0 : index
    %35 = vector.load %arg6[%c0_20, %c0_21] : memref<8x1xf32, #tpu.memory_space<vmem>>, vector<8x1xf32>
    %36 = vector.broadcast %35 : vector<8x1xf32> to vector<8x256xf32>
    %37 = arith.addf %34, %36 : vector<8x256xf32>
    %cst_22 = arith.constant 0.000000e+00 : f32
    %38 = vector.broadcast %cst_22 : f32 to vector<8x256xf32>
    %39 = arith.maximumf %37, %38 : vector<8x256xf32>
    %c0_23 = arith.constant 0 : index
    %c0_24 = arith.constant 0 : index
    %40 = vector.load %arg4[%c0_23, %c0_24] : memref<4x8xf32, #tpu.memory_space<vmem>>, vector<4x8xf32>
    %cst_25 = arith.constant dense<0.000000e+00> : vector<4x256xf32>
    %41 = tpu.matmul %40, %39, %cst_25 {dimension_numbers = #tpu.dot_dimension_numbers<[1], [0], [0], [1], [0, 0, 1, 1], [], []>} : vector<4x8xf32>, vector<8x256xf32>, vector<4x256xf32> -> vector<4x256xf32>
    %42 = arith.addf %1, %41 : vector<4x256xf32>
    %c0_26 = arith.constant 0 : index
    %c0_27 = arith.constant 0 : index
    %c0_28 = arith.constant 0 : index
    %43 = vector.load %arg9[%c0_26, %c0_27, %c0_28] : memref<1x4x256xf32, #tpu.memory_space<vmem>>, vector<1x4x256xf32>
    %44 = vector.shape_cast %43 : vector<1x4x256xf32> to vector<4x256xf32>
    %45 = vector.shape_cast %42 : vector<4x256xf32> to vector<1x4x256xf32>
    tpu.vector_store %arg9[%c0_26, %c0_27, %c0_28], %45 {strides = array<i32>} : memref<1x4x256xf32, #tpu.memory_space<vmem>>, vector<1x4x256xf32>,
    return
  }
  func.func @transform_0(%arg0: i32) -> (i32, i32, i32) {
    %c0_i32 = arith.constant 0 : i32
    %c0_i32_0 = arith.constant 0 : i32
    %c0_i32_1 = arith.constant 0 : i32
    return %arg0, %c0_i32, %c0_i32_0 : i32, i32, i32
  }
  func.func @transform_1(%arg0: i32) -> (i32, i32) {
    %c0_i32 = arith.constant 0 : i32
    %c0_i32_0 = arith.constant 0 : i32
    %c0_i32_1 = arith.constant 0 : i32
    return %c0_i32, %c0_i32_0 : i32, i32
  }
  func.func @transform_2(%arg0: i32) -> (i32, i32) {
    %c0_i32 = arith.constant 0 : i32
    %c0_i32_0 = arith.constant 0 : i32
    %c0_i32_1 = arith.constant 0 : i32
    return %c0_i32, %c0_i32_0 : i32, i32
  }
  func.func @transform_3(%arg0: i32) -> (i32, i32) {
    %c0_i32 = arith.constant 0 : i32
    %c0_i32_0 = arith.constant 0 : i32
    %c0_i32_1 = arith.constant 0 : i32
    return %c0_i32, %c0_i32_0 : i32, i32
  }
  func.func @transform_4(%arg0: i32) -> (i32, i32) {
    %c0_i32 = arith.constant 0 : i32
    %c0_i32_0 = arith.constant 0 : i32
    %c0_i32_1 = arith.constant 0 : i32
    return %c0_i32, %c0_i32_0 : i32, i32
  }
  func.func @transform_5(%arg0: i32) -> (i32, i32) {
    %c0_i32 = arith.constant 0 : i32
    %c0_i32_0 = arith.constant 0 : i32
    %c0_i32_1 = arith.constant 0 : i32
    return %c0_i32, %c0_i32_0 : i32, i32
  }
  func.func @transform_6(%arg0: i32) -> (i32, i32) {
    %c0_i32 = arith.constant 0 : i32
    %c0_i32_0 = arith.constant 0 : i32
    %c0_i32_1 = arith.constant 0 : i32
    return %c0_i32, %c0_i32_0 : i32, i32
  }
  func.func @transform_7(%arg0: i32) -> (i32, i32) {
    %c0_i32 = arith.constant 0 : i32
    %c0_i32_0 = arith.constant 0 : i32
    %c0_i32_1 = arith.constant 0 : i32
    return %c0_i32, %c0_i32_0 : i32, i32
  }
  func.func @transform_8(%arg0: i32) -> (i32, i32, i32) {
    %c0_i32 = arith.constant 0 : i32
    %c0_i32_0 = arith.constant 0 : i32
    %c0_i32_1 = arith.constant 0 : i32
    return %arg0, %c0_i32, %c0_i32_0 : i32, i32, i32
  }
}

</mosaic_0001>

<bundles_post_ra>
// kernel: fasternet_block.1
= control target key start
LH: loop header
LB: loop body
LE: loop exit
PB: predicated region body
PF: predicated region fallthrough
CT: control target
= control target key end

     0   :  { %s1063_s27 = smov 0   ;;  %s1210_s0 = inlined_call_operand.vmem [shape: f32[2,4,256], index: 0, kind: input, shape index: {}]   ;;  %s1211_s1 = inlined_call_operand.vmem [shape: f32[1,9], index: 1, kind: input, shape index: {}]   ;;  %s1212_s2 = inlined_call_operand.vmem [shape: f32[8,4], index: 2, kind: input, shape index: {}]   ;;  %s1213_s3 = inlined_call_operand.vmem [shape: f32[4,8], index: 3, kind: input, shape index: {}]   ;;  %s1214_s4 = inlined_call_operand.vmem [shape: f32[8,1], index: 4, kind: input, shape index: {}]   ;;  %s1215_s5 = inlined_call_operand.vmem [shape: f32[8,1], index: 5, kind: input, shape index: {}]   ;;  %s1216_s6 = inlined_call_operand.vmem [shape: f32[1,256], index: 6, kind: input, shape index: {}]   ;;  %s1217_s7 = inlined_call_operand.vmem [shape: f32[1,256], index: 7, kind: input, shape index: {}]   ;;  %s1218_s8 = inlined_call_operand.vmem [shape: f32[2,4,256], index: 8, kind: output, shape index: {}]  }
   0x1 LB: > { %s898_s28 = sadd.s32 4294967295, %s998_s27   ;;  %p902_p0 = scmp.ge.s32.totalorder %s998_s27, 1  ;;  %s998_s27 = sphi %s1063_s27, %s18_s27  }
   0x2   : > { %p262_p1 = scmp.lt.s32.totalorder %s998_s27, 3 }
   0x4   : > { %p263_p2 = pnand %p902_p0, %p262_p1 }
   0x5   : > { %v1074_v0 = vld [vmem:[%s1216_s6] sm:$0x3] (!%p263_p2)  ;;  %p296_p3 = scmp.lt.s32.totalorder (!%p263_p2), %s898_s28, 1  ;;  %v307_v1 = vlaneseq (!%p263_p2)  ;;  %s1000_s9 = smov (!%p263_p2), 16   ;;  %v1001_v2 = vmov (!%p263_p2), 1966171168  }
   0x6   : > { %266 = sbr.rel (%p263_p2) target bundleno = 958 (0x3be), region = 52  ;;  %353 = vrot.lane.b32.xlu1 (!%p263_p2), %v1074_v0, %s1000_s9  ;;  %v318_v3 = vunpack.c.l.s4 (!%p263_p2), %v1001_v2  ;;  %v342_v4 = vld [vmem:[%s1217_s7] sm:$0x3] (!%p263_p2)  ;;  %v1002_v7 = vmov (!%p263_p2), 0.0   ;;  %s1003_s16 = smov (!%p263_p2), 18   ;;  %vm334_vm6 = vcmask (!%p263_p2), 138240  }
   0x7   : > { %v321_v5 = vshrl.u32 (!%p263_p2), %v307_v1, 7  ;;  %vm309_vm0 = vcmp.lt.s32.totalorder (!%p263_p2), %v307_v1, 17  ;;  %vm1082_vm1 = vcmp.ge.s32.totalorder (!%p263_p2), %v307_v1, 17  ;;  %vm313_vm2 = vcmp.lt.s32.totalorder (!%p263_p2), %v307_v1, 34  ;;  %650 = vmatprep.mubr.f32.mxu0 (!%p263_p2), %v1002_v7  ;;  %736 = vmatprep.mubr.f32.mxu1 (!%p263_p2), %v1002_v7  ;;  %s1004_s17 = smov (!%p263_p2), 34   ;;  %s1005_s18 = smov (!%p263_p2), 17  }
   0x8   : > { %v319_v8 = vunpack.c.0.s8 (!%p263_p2), %v318_v3  ;;  %311 = vst.msk [vmem:[#allocation2] sm:$0x1] (!%p263_p2), %vm309_vm0, %v1002_v7  ;;  %vm314_vm3 = vmand (!%p263_p2), %vm1082_vm1, %vm313_vm2  ;;  %vm1091_vm4 = vcmp.lt.s32.totalorder (!%p263_p2), %v307_v1, 273  ;;  %s1006_s19 = smov (!%p263_p2), 2   ;;  %s1007_s20 = smov (!%p263_p2), 32   ;;  %vm348_vm7 = vcmask (!%p263_p2), 15360  }
   0x9   : > { %315 = vst.msk [vmem:[#allocation2 + $0x2] sm:$0x1] (!%p263_p2), %vm314_vm3, %v1002_v7  ;;  %vm338_vm5 = vmand (!%p263_p2), %vm1082_vm1, %vm1091_vm4  ;;  %v1115_v17 = vsub.s32 (!%p263_p2), 0, %v321_v5  ;;  %v1117_v18 = vsub.s32 (!%p263_p2), 1, %v321_v5  ;;  %v1119_v19 = vsub.s32 (!%p263_p2), 2, %v321_v5  ;;  %s1008_s21 = smov (!%p263_p2), 127  }
   0xa   : > { %v322_v10 = vsub.s32 (!%p263_p2), %v319_v8, %v321_v5  ;;  %360 = vrot.lane.b32.xlu1 (!%p263_p2), %v342_v4, %s1003_s16  ;;  %vm356_vm8 = vcmask (!%p263_p2), 130048   ;;  %s1009_s22 = smov (!%p263_p2), 111   ;;  %vm363_vm9 = vcmask (!%p263_p2), 146432   ;;  %s1010_s23 = smov (!%p263_p2), 95   ;;  %vm370_vm10 = vcmask (!%p263_p2), 261120  }
   0xb   : > { %s1011_s24 = smov (!%p263_p2), 126   ;;  %vm377_vm11 = vcmask (!%p263_p2), 277504   ;;  %s1012_s25 = smov (!%p263_p2), 112   ;;  %vm411_vm12 = vcmask (!%p263_p2), 1039360   ;;  %vm435_vm13 = vcmask (!%p263_p2), 1031168   ;;  %vm459_vm14 = vcmask (!%p263_p2), 916480  }
   0xc   : > { %s1013_s26 = smov (!%p263_p2), 110   ;;  %s1014_s29 = smov (!%p263_p2), 96   ;;  %vm556_vm15 = vcmask (!%p263_p2), 1040384   ;;  %vm470_vm0 = vcmask (!%p263_p2), 908288   ;;  %vm494_vm1 = vcmask (!%p263_p2), 900096   ;;  %vm559_vm2 = vcmask (!%p263_p2), 1041408  }
   0xd   : > { %s1224_s28 = smov (!%p296_p3, %s898_s28), 1  ;;  %s1015_s30 = smov 94   ;;  %vm562_vm3 = vcmask 1042432   ;;  %vm529_vm4 = vcmask 777216  }
   0xe   : > { %s916_s12 = sshll.u32 %s1224_s28, 3  ;;  %374 = vrot.lane.b32.xlu1 %v342_v4, %s1004_s17 }
   0xf   : > { %s300_s15 = scalar_lea.vmem %s1210_s0, %s916_s12 }
  0x10   : > { %v1106_v11 = vld [vmem:[%s300_s15] sm:$0xff] }
  0x11   : > { %v323_v12 = vrot.slane %v1106_v11, %v322_v10 }
  0x13   : > { %v330_v13 = vrot.slane %v323_v12, %v322_v10 }
  0x15   : > { %331 = vrot.lane.b32.xlu0 %v330_v13, %s1005_s18 }
  0x19   : > { %345 = vrot.lane.b32.xlu0 %v342_v4, %s1006_s19 }
  0x1d   : > { %367 = vrot.lane.b32.xlu0 %v1074_v0, %s1007_s20 }
  0x78   : > { %v354_v23 = vpop.permute.xlu1 %353 }
  0x79   : > { %v355_v28 = vrot.slane %v354_v23, 7 }
  0x7b   : > { %v357_v32 = vsel %vm356_vm8, %v355_v28, %v354_v23  ;;  %vm568_vm8 = vcmask 1044480  }
  0x7c   : > { %v361_v30 = vpop.permute.xlu1 %360 }
  0x7d   : > { %v362_v33 = vrot.slane %v361_v30, 7 }
  0x7f   : > { %v364_v41 = vsel %vm363_vm9, %v362_v33, %v361_v30  ;;  %vm571_vm9 = vcmask 1045504  }
  0x80   : > { %v375_v43 = vpop.permute.xlu1 %374 }
  0x81   : > { %v376_v49 = vrot.slane %v375_v43, 7 }
  0x83   : > { %v378_v56 = vsel %vm377_vm11, %v376_v49, %v375_v43  ;;  %vm1016_vm11 = vmmov 1  }
  0x87   : > { %v332_v14 = vpop.permute.xlu0 %331 }
  0x88   : > { %v333_v15 = vrot.slane %v332_v14, 7 }
  0x8a   : > { %v335_v16 = vsel %vm334_vm6, %v333_v15, %v332_v14  ;;  %vm553_vm6 = vcmask 769024  }
  0x8b   : > { %339 = vst.msk [vmem:[#allocation2] sm:$0x7] %vm338_vm5, %v335_v16  ;;  %v346_v21 = vpop.permute.xlu0 %345  ;;  %vm518_vm5 = vcmask 785408  }
  0x8c   : > { %v347_v22 = vrot.slane %v346_v21, 7 }
  0x8e   : > { %v349_v29 = vsel %vm348_vm7, %v347_v22, %v346_v21  ;;  %vm565_vm7 = vcmask 1043456  }
  0x8f   : > { %v368_v35 = vpop.permute.xlu0 %367 }
  0x90   : > { %v369_v42 = vrot.slane %v368_v35, 7 }
  0x92   : > { %v340_v20 = vld [vmem:[#allocation2] sm:$0x7]  ;;  %v371_v50 = vsel %vm370_vm10, %v369_v42, %v368_v35  ;;  %vm574_vm10 = vcmask 1046528  }
  0x93   : > { %v396_v24 = vrot.slane %v340_v20, %v1115_v17  ;;  %v400_v25 = vrot.slane %v340_v20, %v1117_v18  ;;  %v404_v26 = vrot.slane %v340_v20, %v1119_v19  ;;  %v351_v31 = vmul.f32 %v349_v29, %v340_v20 }
  0x94   : > { %v1125_v34 = vmul.f32 %v1074_v0, %v340_v20  ;;  %v359_v40 = vmul.f32 %v357_v32, %v340_v20  ;;  %v366_v45 = vmul.f32 %v364_v41, %v340_v20  ;;  %v373_v52 = vmul.f32 %v371_v50, %v340_v20 }
  0x95   : > { %405 = vrot.lane.b32.xlu1 %v396_v24, %s1008_s21  ;;  %v950_v27 = vpack.i.bf16 %v404_v26, %v400_v25  ;;  %v424_v38 = vrot.slane %v351_v31, %v1117_v18  ;;  %v428_v39 = vrot.slane %v351_v31, %v1119_v19  ;;  %v420_v44 = vrot.slane %v351_v31, %v1115_v17 }
  0x96   : > { %v385_v36 = vrot.slane %v1125_v34, %v1115_v17  ;;  %v389_v37 = vrot.slane %v1125_v34, %v1117_v18  ;;  %v448_v47 = vrot.slane %v359_v40, %v1117_v18  ;;  %v452_v48 = vrot.slane %v359_v40, %v1119_v19 }
  0x97   : > { %951 = vrot.lane.b32.xlu0 %v950_v27, %s1008_s21  ;;  %v965_v46 = vpack.i.bf16 %v428_v39, %v424_v38  ;;  %v444_v51 = vrot.slane %v359_v40, %v1115_v17  ;;  %v483_v54 = vrot.slane %v366_v45, %v1117_v18  ;;  %v487_v55 = vrot.slane %v366_v45, %v1119_v19 }
  0x98   : > { %v970_v53 = vpack.i.bf16 %v452_v48, %v448_v47  ;;  %v479_v57 = vrot.slane %v366_v45, %v1115_v17  ;;  %v380_v58 = vmul.f32 %v378_v56, %v340_v20  ;;  %v507_v60 = vrot.slane %v373_v52, %v1117_v18 }
  0x99   : > { %464 = vrot.lane.b32.xlu1 %v396_v24, %s1009_s22  ;;  %v975_v59 = vpack.i.bf16 %v487_v55, %v483_v54  ;;  %v511_v61 = vrot.slane %v373_v52, %v1119_v19  ;;  %v503_v62 = vrot.slane %v373_v52, %v1115_v17 }
  0x9a   : > { %v542_v0 = vrot.slane %v380_v58, %v1117_v18  ;;  %v546_v1 = vrot.slane %v380_v58, %v1119_v19  ;;  %v538_v2 = vrot.slane %v380_v58, %v1115_v17 }
  0x9b   : > { %956 = vrot.lane.b32.xlu0 %v950_v27, %s1009_s22  ;;  %v980_v63 = vpack.i.bf16 %v511_v61, %v507_v60  ;;  %s305_s22 = scalar_lea.vmem %s1218_s8, %s916_s12 }
  0x9c   : > { %v985_v3 = vpack.i.bf16 %v546_v1, %v542_v0 }
  0x9d   : > { %523 = vrot.lane.b32.xlu1 %v396_v24, %s1010_s23 }
  0x9f   : > { %961 = vrot.lane.b32.xlu0 %v950_v27, %s1010_s23 }
  0xa1   : > { %429 = vrot.lane.b32.xlu1 %v420_v44, %s1011_s24 }
  0xa3   : > { %966 = vrot.lane.b32.xlu0 %v965_v46, %s1011_s24 }
  0xa5   : > { %453 = vrot.lane.b32.xlu1 %v444_v51, %s1012_s25 }
  0xa7   : > { %971 = vrot.lane.b32.xlu0 %v970_v53, %s1012_s25 }
  0xa9   : > { %488 = vrot.lane.b32.xlu1 %v479_v57, %s1013_s26 }
  0xab   : > { %976 = vrot.lane.b32.xlu0 %v975_v59, %s1013_s26 }
  0xad   : > { %512 = vrot.lane.b32.xlu1 %v503_v62, %s1014_s29 }
  0xaf   : > { %981 = vrot.lane.b32.xlu0 %v980_v63, %s1014_s29 }
  0xb1   : > { %547 = vrot.lane.b32.xlu1 %v538_v2, %s1015_s30 }
  0xb3   : > { %986 = vrot.lane.b32.xlu0 %v985_v3, %s1015_s30 }
 0x107   : > { %v406_v4 = vpop.permute.xlu1 %405 }
 0x109   : > { %v952_v5 = vpop.permute.xlu0 %951 }
 0x10a   : > { %v954_v14 = vunpack.i.h.bf16 %v952_v5  ;;  %v953_v15 = vunpack.i.l.bf16 %v952_v5 }
 0x10b   : > { %v465_v6 = vpop.permute.xlu1 %464 }
 0x10c   : > { %v412_v22 = vsel %vm411_vm12, %v406_v4, %v953_v15  ;;  %v413_v23 = vsel %vm411_vm12, %v953_v15, %v954_v14  ;;  %vm919_vm12 = vmpackc.low %vm556_vm15, %vm1016_vm11 }
 0x10d   : > { %v957_v8 = vpop.permute.xlu0 %956  ;;  %v557_v32 = vsel %vm556_vm15, %v385_v36, %v412_v22  ;;  %v558_v33 = vsel %vm556_vm15, %v389_v37, %v413_v23 }
 0x10e   : > { %v959_v35 = vunpack.i.h.bf16 %v957_v8  ;;  %v958_v38 = vunpack.i.l.bf16 %v957_v8  ;;  %v743_v8 = vld [vmem:[%s1214_s4] sm:$0xff] }
 0x10f   : > { %v1146_v9 = vpop.permute.xlu1 %523 }
 0x110   : > { %v471_v44 = vsel %vm470_vm0, %v465_v6, %v958_v38  ;;  %v472_v45 = vsel %vm470_vm0, %v958_v38, %v959_v35  ;;  %v577_v6 = vld [vmem:[%s1211_s1] sm:$0x1] }
 0x111   : > { %v1148_v10 = vpop.permute.xlu0 %961 }
 0x112   : > { %v964_v48 = vunpack.i.h.bf16 %v1148_v10  ;;  %v963_v49 = vunpack.i.l.bf16 %v1148_v10  ;;  %v1017_v10 = vmov 0  }
 0x113   : > { %v430_v12 = vpop.permute.xlu1 %429  ;;  %990 = vset.pattern.permute.xlu0 %v1017_v10  ;;  %991 = vset.pattern.permute.xlu1 %v1017_v10 }
 0x114   : > { %v530_v61 = vsel %vm529_vm4, %v1146_v9, %v963_v49  ;;  %v531_v63 = vsel %vm529_vm4, %v963_v49, %v964_v48  ;;  %v751_v9 = vld [vmem:[%s1215_s5] sm:$0xff]  ;;  %746 = vperm.xlu0 %990, %v743_v8  }
 0x115   : > { %v967_v13 = vpop.permute.xlu0 %966  ;;  %754 = vperm.xlu1 %991, %v751_v9  }
 0x116   : > { %v969_v19 = vunpack.i.h.bf16 %v967_v13  ;;  %v968_v20 = vunpack.i.l.bf16 %v967_v13 }
 0x117   : > { %v454_v16 = vpop.permute.xlu1 %453 }
 0x118   : > { %v436_v27 = vsel %vm435_vm13, %v430_v12, %v968_v20  ;;  %v437_v28 = vsel %vm435_vm13, %v968_v20, %v969_v19  ;;  %vm578_vm13 = vcmask 72704   ;;  %v657_v12 = vcombine.high %v1106_v11, %v1106_v11 }
 0x119   : > { %v972_v21 = vpop.permute.xlu0 %971  ;;  %v560_v41 = vsel %vm559_vm2, %v557_v32, %v436_v27  ;;  %v561_v42 = vsel %vm559_vm2, %v558_v33, %v437_v28 }
 0x11a   : > { %v974_v24 = vunpack.i.h.bf16 %v972_v21  ;;  %v973_v25 = vunpack.i.l.bf16 %v972_v21 }
 0x11b   : > { %v489_v26 = vpop.permute.xlu1 %488 }
 0x11c   : > { %v460_v29 = vsel %vm459_vm14, %v454_v16, %v973_v25  ;;  %v461_v30 = vsel %vm459_vm14, %v973_v25, %v974_v24  ;;  %v661_v16 = vld [vmem:[%s1212_s2] sm:$0xff]  ;;  %vm662_vm14 = vcmask 31744  }
 0x11d   : > { %v977_v31 = vpop.permute.xlu0 %976  ;;  %v564_v43 = vsel %vm562_vm3, %v561_v42, %v461_v30  ;;  %v563_v17 = vsel %vm562_vm3, %v560_v41, %v460_v29  ;;  %v761_v30 = vld [vmem:[%s1213_s3] sm:$0xf] }
 0x11e   : > { %v979_v39 = vunpack.i.h.bf16 %v977_v31  ;;  %v978_v40 = vunpack.i.l.bf16 %v977_v31  ;;  %v567_v50 = vsel %vm565_vm7, %v564_v43, %v472_v45  ;;  %v566_v51 = vsel %vm565_vm7, %v563_v17, %v471_v44 }
 0x11f   : > { %v513_v34 = vpop.permute.xlu1 %512 }
 0x120   : > { %v495_v36 = vsel %vm494_vm1, %v489_v26, %v978_v40  ;;  %v496_v18 = vsel %vm494_vm1, %v978_v40, %v979_v39 }
 0x121   : > { %v982_v37 = vpop.permute.xlu0 %981  ;;  %v570_v54 = vsel %vm568_vm8, %v567_v50, %v496_v18  ;;  %v569_v55 = vsel %vm568_vm8, %v566_v51, %v495_v36 }
 0x122   : > { %v984_v46 = vunpack.i.h.bf16 %v982_v37  ;;  %v983_v47 = vunpack.i.l.bf16 %v982_v37 }
 0x123   : > { %v548_v62 = vpop.permute.xlu1 %547 }
 0x124   : > { %v519_v52 = vsel %vm518_vm5, %v513_v34, %v983_v47  ;;  %v520_v53 = vsel %vm518_vm5, %v983_v47, %v984_v46 }
 0x125   : > { %v987_v56 = vpop.permute.xlu0 %986  ;;  %v573_v57 = vsel %vm571_vm9, %v570_v54, %v520_v53  ;;  %v572_v58 = vsel %vm571_vm9, %v569_v55, %v519_v52 }
 0x126   : > { %v989_v59 = vunpack.i.h.bf16 %v987_v56  ;;  %v988_v60 = vunpack.i.l.bf16 %v987_v56  ;;  %v576_v1 = vsel %vm574_vm10, %v573_v57, %v531_v63  ;;  %v575_v3 = vsel %vm574_vm10, %v572_v58, %v530_v61 }
 0x128   : > { %v555_v0 = vsel %vm553_vm6, %v988_v60, %v989_v59  ;;  %v554_v2 = vsel %vm553_vm6, %v548_v62, %v988_v60 }
 0x129   : > { %v918_v4 = vpack.c.bf16 %v555_v0, %v576_v1  ;;  %v921_v5 = vpack.c.bf16 %v554_v2, %v575_v3 }
 0x12b   : > { %920 = vmatprep.subr.msk.bf16.mxu0 %vm919_vm12, %v918_v4 }
 0x12c   : > { %923 = vmatpush1.bf16.msk.msra.mxu0 %vm919_vm12, %v921_v5 }
 0x12f   : > { %909 = vmatmul.mubr.msk.f32.vlgmr.msra.gmra.mrb[0].mxu0 %vm578_vm13, %v577_v6 }
 0x193   : > { %v747_v20 = vpop.permute.xlu0 %746 }
 0x194   : > { %v755_v22 = vpop.permute.xlu1 %754 }
 0x202   : > { %v652_v13 = vpop.f32.mrb[0].mxu0 }
 0x203   : > { %v654_v14 = vpop.f32.mrb[1].mxu0  ;;  %v659_v19 = vsel %vm556_vm15, %v652_v13, %v1106_v11 }
 0x204   : > { %v660_v15 = vsel %vm556_vm15, %v654_v14, %v657_v12  ;;  %vm762_vm15 = vcmask 64512  }
 0x205   : > { %910 = vmatprep.subr.msk.mxu1 %vm565_vm7, %v660_v15 }
 0x206   : > { %911 = vmatpush1.msk.msra.mxu1 %vm565_vm7, %v659_v19 }
 0x207   : > { %912 = vmatmul.mubr.msk.f32.vlgmr.msra.gmra.mrb[0].mxu1 %vm662_vm14, %v661_v16 }
 0x208   : > { %830 = vmatprep.mubr.f32.mxu1 %v1002_v7 }
 0x2da   : > { %v738_v21 = vpop.f32.mrb[0].mxu1 }
 0x2db   : > { %v749_v23 = vmul.f32 %v747_v20, %v738_v21  ;;  %v740_v24 = vpop.f32.mrb[1].mxu1 }
 0x2dc   : > { %v750_v25 = vmul.f32 %v747_v20, %v740_v24 }
 0x2dd   : > { %v757_v26 = vadd.f32 %v755_v22, %v749_v23 }
 0x2de   : > { %v758_v27 = vadd.f32 %v755_v22, %v750_v25 }
 0x2df   : > { %v759_v29 = vmax.f32 %v757_v26, 0.0 }
 0x2e0   : > { %v760_v28 = vmax.f32 %v758_v27, 0.0 }
 0x2e2   : > { %766 = vmatprep.subr.mxu1 %v760_v28 }
 0x2e3   : > { %767 = vmatpush1.msra.mxu1 %v759_v29 }
 0x2e4   : > { %913 = vmatmul.mubr.msk.f32.vlgmr.msra.gmra.mrb[2].mxu1 %vm762_vm15, %v761_v30 }
 0x3b7   : > { %v832_v7 = vpop.f32.mrb[2].mxu1 }
 0x3b8   : > { %v834_v31 = vpop.f32.mrb[3].mxu1 }
 0x3b9   : > { %v839_v32 = vcombine.low %v832_v7, %v834_v31 }
 0x3bb   : > { %v841_v33 = vadd.f32 %v839_v32, %v1106_v11 }
 0x3bd   : > { %842 = vst [vmem:[%s305_s22] sm:$0xff] %v841_v33 }
 0x3be PF: > { %s18_s27 = sadd.s32 1, %s998_s27  }
 0x3bf   : > { %p15_p4 = scmp.ge.s32.totalorder %s18_s27, 4  }
 0x3c1   :  { %17 = sbr.rel (!%p15_p4) target bundleno = 1 (0x1), region = 82 }

</bundles_post_ra>
